<compile_context>
chip_gen: v5e
topology: v5e:2x2
jax: 0.10.0
libtpu: 0.0.40
codegen_flags: <defaults>
</compile_context>

<pallas_src>
import jax
import jax.numpy as jnp
from jax.experimental import pallas as pl
from jax.experimental.pallas import tpu as pltpu

# ----- small, module-consistent stand-in shapes (for 3*224*224 / 10000 / 5000 / 2) -----
B = 2                 # batch
C, H, W = 3, 16, 16
D_IN = C * H * W      # 768   (stands in for 3*224*224)
D_H1 = 256            # stands in for 10000
D_H2 = 128            # stands in for 5000
D_OUT = 2             # final logits (cat / dog)
D_OUT_PAD = 128       # lane-dense padded logits; wrapper slices [:, :D_OUT]
B_PAD = 8             # pad batch to the f32 sublane count


def fused_mlp_kernel(x_ref, w1_ref, b1_ref, w2_ref, b2_ref, w3_ref, b3_ref, o_ref):
    # tanh once, in f32 (EUP path); feed the MXU bf16, accumulate in f32.
    # tanh is elementwise, so applying it on the flattened view == applying it pre-flatten.
    x = jnp.tanh(x_ref[...]).astype(jnp.bfloat16)

    h1 = jnp.dot(x, w1_ref[...], preferred_element_type=jnp.float32)
    h1 = jnp.maximum(h1 + b1_ref[...], 0.0).astype(jnp.bfloat16)

    h2 = jnp.dot(h1, w2_ref[...], preferred_element_type=jnp.float32)
    h2 = jnp.maximum(h2 + b2_ref[...], 0.0).astype(jnp.bfloat16)

    logits = jnp.dot(h2, w3_ref[...], preferred_element_type=jnp.float32) + b3_ref[...]
    o_ref[...] = logits.astype(o_ref.dtype)


def neural_network_forward(x_nchw, params):
    """x_nchw: [B, C, H, W] float32. Returns logits [B, 2] (float32)."""
    w1, b1, w2, b2, w3p, b3p = params
    b = x_nchw.shape[0]
    assert b <= B_PAD
    x_flat = x_nchw.reshape(b, -1).astype(jnp.float32)  # nn.Flatten on NCHW
    # Pad batch to a sublane multiple; padded rows are sliced off at the end.
    x_pad = jnp.zeros((B_PAD, D_IN), jnp.float32).at[:b, :].set(x_flat)

    flops = 2 * B_PAD * (D_IN * D_H1 + D_H1 * D_H2 + D_H2 * D_OUT_PAD)
    transcendentals = B_PAD * D_IN  # tanh, once
    bytes_accessed = (
        x_pad.size * 4
        + (w1.size + w2.size + w3p.size) * 2          # bf16 weights
        + (b1.size + b2.size + b3p.size) * 4          # f32 biases
        + B_PAD * D_OUT_PAD * 4                       # output
    )

    # Single invocation (grid=()): every operand fits VMEM at these shapes, so full
    # arrays are DMA'd once and the whole MLP runs in one step — no per-step grid
    # overhead, no redundant tanh / DMA, no scratch.
    out = pl.pallas_call(
        fused_mlp_kernel,
        out_shape=jax.ShapeDtypeStruct((B_PAD, D_OUT_PAD), jnp.float32),
        cost_estimate=pl.CostEstimate(
            flops=int(flops),
            transcendentals=int(transcendentals),
            bytes_accessed=int(bytes_accessed)),
    )(x_pad, w1, b1, w2, b2, w3p, b3p)

    return out[:b, :D_OUT]


def init_params(key):
    """PyTorch-Linear-style init U(-1/sqrt(fan_in), +1/sqrt(fan_in)).
    Weights stored as bf16 [in, out]; last layer zero-padded to 128 output lanes."""
    ks = jax.random.split(key, 6)

    def lin(kw, kb, fan_in, fan_out, pad_out=None):
        bound = 1.0 / jnp.sqrt(jnp.float32(fan_in))
        w = jax.random.uniform(kw, (fan_in, fan_out), jnp.float32, -bound, bound)
        b = jax.random.uniform(kb, (1, fan_out), jnp.float32, -bound, bound)
        if pad_out is not None and pad_out > fan_out:
            w = jnp.pad(w, ((0, 0), (0, pad_out - fan_out)))
            b = jnp.pad(b, ((0, 0), (0, pad_out - fan_out)))
        return w.astype(jnp.bfloat16), b.astype(jnp.float32)

    w1, b1 = lin(ks[0], ks[1], D_IN, D_H1)
    w2, b2 = lin(ks[2], ks[3], D_H1, D_H2)
    w3p, b3p = lin(ks[4], ks[5], D_H2, D_OUT, pad_out=D_OUT_PAD)
    return (w1, b1, w2, b2, w3p, b3p)


if __name__ == "__main__":
    key = jax.random.PRNGKey(0)
    k_x, k_p = jax.random.split(key)

    x = jax.random.normal(k_x, (B, C, H, W), jnp.float32)  # NCHW, like PyTorch
    params = init_params(k_p)

    logits = neural_network_forward(x, params)
    jax.block_until_ready(logits)

    # Pure-JAX reference with the same bf16 matmul casts (f32 accumulation).
    w1, b1, w2, b2, w3p, b3p = params
    xf = jnp.tanh(x.reshape(B, -1)).astype(jnp.bfloat16)
    h1 = jnp.maximum(jnp.dot(xf, w1, preferred_element_type=jnp.float32) + b1, 0.0)
    h2 = jnp.maximum(
        jnp.dot(h1.astype(jnp.bfloat16), w2, preferred_element_type=jnp.float32) + b2, 0.0)
    ref = (jnp.dot(h2.astype(jnp.bfloat16), w3p,
                   preferred_element_type=jnp.float32) + b3p)[:, :D_OUT]

    assert logits.shape == (B, D_OUT)
    assert jnp.allclose(logits, ref, atol=2e-2, rtol=2e-2)

    print("KERNEL_OK")
</pallas_src>

<mosaic_0001>
module attributes {stable_mosaic.version = 11 : i64} {
  func.func @fused_mlp_kernel(%arg0: memref<8x768xf32, #tpu.memory_space<vmem>>, %arg1: memref<768x256xbf16, #tpu.memory_space<vmem>>, %arg2: memref<1x256xf32, #tpu.memory_space<vmem>>, %arg3: memref<256x128xbf16, #tpu.memory_space<vmem>>, %arg4: memref<1x128xf32, #tpu.memory_space<vmem>>, %arg5: memref<128x128xbf16, #tpu.memory_space<vmem>>, %arg6: memref<1x128xf32, #tpu.memory_space<vmem>>, %arg7: memref<8x128xf32, #tpu.memory_space<vmem>>) attributes {dimension_semantics = [], scalar_prefetch = 0 : i64, scratch_operands = 0 : i64, tpu.core_type = #tpu.core_type<tc>} {
    %c0 = arith.constant 0 : index
    %c0_0 = arith.constant 0 : index
    %0 = vector.load %arg0[%c0, %c0_0] : memref<8x768xf32, #tpu.memory_space<vmem>>, vector<8x768xf32>
    %1 = math.tanh %0 : vector<8x768xf32>
    %2 = arith.truncf %1 : vector<8x768xf32> to vector<8x768xbf16>
    %c0_1 = arith.constant 0 : index
    %c0_2 = arith.constant 0 : index
    %3 = vector.load %arg1[%c0_1, %c0_2] : memref<768x256xbf16, #tpu.memory_space<vmem>>, vector<768x256xbf16>
    %cst = arith.constant dense<0.000000e+00> : vector<8x256xf32>
    %4 = tpu.matmul %2, %3, %cst {dimension_numbers = #tpu.dot_dimension_numbers<[1], [0], [0], [1], [0, 0, 1, 1], [], []>} : vector<8x768xbf16>, vector<768x256xbf16>, vector<8x256xf32> -> vector<8x256xf32>
    %c0_3 = arith.constant 0 : index
    %c0_4 = arith.constant 0 : index
    %5 = vector.load %arg2[%c0_3, %c0_4] : memref<1x256xf32, #tpu.memory_space<vmem>>, vector<1x256xf32>
    %6 = vector.broadcast %5 : vector<1x256xf32> to vector<8x256xf32>
    %7 = arith.addf %4, %6 : vector<8x256xf32>
    %cst_5 = arith.constant 0.000000e+00 : f32
    %8 = vector.broadcast %cst_5 : f32 to vector<8x256xf32>
    %9 = arith.maximumf %7, %8 : vector<8x256xf32>
    %10 = arith.truncf %9 : vector<8x256xf32> to vector<8x256xbf16>
    %c0_6 = arith.constant 0 : index
    %c0_7 = arith.constant 0 : index
    %11 = vector.load %arg3[%c0_6, %c0_7] : memref<256x128xbf16, #tpu.memory_space<vmem>>, vector<256x128xbf16>
    %cst_8 = arith.constant dense<0.000000e+00> : vector<8x128xf32>
    %12 = tpu.matmul %10, %11, %cst_8 {dimension_numbers = #tpu.dot_dimension_numbers<[1], [0], [0], [1], [0, 0, 1, 1], [], []>} : vector<8x256xbf16>, vector<256x128xbf16>, vector<8x128xf32> -> vector<8x128xf32>
    %c0_9 = arith.constant 0 : index
    %c0_10 = arith.constant 0 : index
    %13 = vector.load %arg4[%c0_9, %c0_10] : memref<1x128xf32, #tpu.memory_space<vmem>>, vector<1x128xf32>
    %14 = vector.broadcast %13 : vector<1x128xf32> to vector<8x128xf32>
    %15 = arith.addf %12, %14 : vector<8x128xf32>
    %cst_11 = arith.constant 0.000000e+00 : f32
    %16 = vector.broadcast %cst_11 : f32 to vector<8x128xf32>
    %17 = arith.maximumf %15, %16 : vector<8x128xf32>
    %18 = arith.truncf %17 : vector<8x128xf32> to vector<8x128xbf16>
    %c0_12 = arith.constant 0 : index
    %c0_13 = arith.constant 0 : index
    %19 = vector.load %arg5[%c0_12, %c0_13] : memref<128x128xbf16, #tpu.memory_space<vmem>>, vector<128x128xbf16>
    %cst_14 = arith.constant dense<0.000000e+00> : vector<8x128xf32>
    %20 = tpu.matmul %18, %19, %cst_14 {dimension_numbers = #tpu.dot_dimension_numbers<[1], [0], [0], [1], [0, 0, 1, 1], [], []>} : vector<8x128xbf16>, vector<128x128xbf16>, vector<8x128xf32> -> vector<8x128xf32>
    %c0_15 = arith.constant 0 : index
    %c0_16 = arith.constant 0 : index
    %21 = vector.load %arg6[%c0_15, %c0_16] : memref<1x128xf32, #tpu.memory_space<vmem>>, vector<1x128xf32>
    %22 = vector.broadcast %21 : vector<1x128xf32> to vector<8x128xf32>
    %23 = arith.addf %20, %22 : vector<8x128xf32>
    %c0_17 = arith.constant 0 : index
    %c0_18 = arith.constant 0 : index
    %24 = vector.load %arg7[%c0_17, %c0_18] : memref<8x128xf32, #tpu.memory_space<vmem>>, vector<8x128xf32>
    tpu.vector_store %arg7[%c0_17, %c0_18], %23 {strides = array<i32>} : memref<8x128xf32, #tpu.memory_space<vmem>>, vector<8x128xf32>,
    return
  }
}

</mosaic_0001>

<bundles_post_ra>
// kernel: tpu_custom_call.1
= control target key start
LH: loop header
LB: loop body
LE: loop exit
PB: predicated region body
PF: predicated region fallthrough
CT: control target
= control target key end

     0   :  { %12 = vsyncpa [#allocation3], 0  ;;  %s1996_s0 = inlined_call_operand.hbm [shape: f32[8,768], index: 0, kind: input, shape index: {}]   ;;  %s1997_s1 = inlined_call_operand.hbm [shape: bf16[768,256], index: 1, kind: input, shape index: {}]   ;;  %s1998_s2 = inlined_call_operand.hbm [shape: f32[1,256], index: 2, kind: input, shape index: {}]   ;;  %s1999_s3 = inlined_call_operand.hbm [shape: bf16[256,128], index: 3, kind: input, shape index: {}]   ;;  %s2000_s4 = inlined_call_operand.vmem [shape: f32[1,128], index: 4, kind: input, shape index: {}]   ;;  %s2001_s5 = inlined_call_operand.hbm [shape: bf16[128,128], index: 5, kind: input, shape index: {}]   ;;  %s2002_s6 = inlined_call_operand.vmem [shape: f32[1,128], index: 6, kind: input, shape index: {}]   ;;  %s2003_s7 = inlined_call_operand.hbm [shape: f32[8,128], index: 7, kind: output, shape index: {}]  }
   0x1   :  { %13 = vsyncpa [#allocation6], 0 }
   0x2   :  { %14 = vsyncpa [#allocation9], 0  ;;  %s31_s26 = sshll.u32 %s1997_s1, 4  ;;  %s32_s26 = int_to_ptr.hbm [resolvable:$true] %s31_s26 }
   0x3   :  { %15 = vsyncpa [#allocation4], 0  ;;  %s1898_s27 = smov [#allocation5]   ;;  %s55_s8 = sshll.u32 %s1999_s3, 4  ;;  %s56_s8 = int_to_ptr.hbm [resolvable:$true] %s55_s8 }
   0x4   :  { %s33_s28 = sshll.u32 %s1898_s27, 4  ;;  %s1899_s9 = smov 128   ;;  %s34_s28 = int_to_ptr.vmem [resolvable:$true] %s33_s28 }
   0x5   :  { %s1900_s10 = smov 8   ;;  %s1901_s11 = smov [#allocation8]  }
   0x6   :  { %39 = dma.hbm_to_vmem [thread:$0]  %s32_s26, 12288, %s34_s28, [#allocation6], %s1899_s9, %s1899_s9, %s1900_s10  }
   0x7   :  { %s57_s12 = sshll.u32 %s1901_s11, 4  ;;  %s1902_s13 = smov 64   ;;  %s58_s12 = int_to_ptr.vmem [resolvable:$true] %s57_s12 }
   0x8   :  { %s1903_s14 = smov 4   ;;  %s21_s16 = sshll.u32 %s1996_s0, 4  ;;  %s22_s16 = int_to_ptr.hbm [resolvable:$true] %s21_s16 }
   0x9   :  { %63 = dma.hbm_to_vmem [thread:$0]  %s56_s8, 2048, %s58_s12, [#allocation9], %s1902_s13, %s1902_s13, %s1903_s14  }
   0xa   :  { %s1904_s17 = smov [#allocation2]   ;;  %s45_s20 = sshll.u32 %s1998_s2, 4  ;;  %s46_s20 = int_to_ptr.hbm [resolvable:$true] %s45_s20 }
   0xb   :  { %s23_s18 = sshll.u32 %s1904_s17, 4  ;;  %s1905_s21 = smov [#allocation7]   ;;  %s24_s18 = int_to_ptr.vmem [resolvable:$true] %s23_s18 }
   0xc   :  { %26 = dma.hbm_to_vmem [thread:$0]  %s22_s16, 768, %s24_s18, [#allocation3]  }
   0xd   :  { %s47_s22 = sshll.u32 %s1905_s21, 4  ;;  %s70_s25 = sshll.u32 %s2001_s5, 4  ;;  %s48_s22 = int_to_ptr.vmem [resolvable:$true] %s47_s22  ;;  %s71_s25 = int_to_ptr.hbm [resolvable:$true] %s70_s25 }
   0xe   :  { %50 = dma.hbm_to_vmem [thread:$0]  %s46_s20, 32, %s48_s22, [#allocation6]  }
   0xf   :  { %s1906_s0 = smov [#allocation10]  }
  0x10   :  { %s72_s26 = sshll.u32 %s1906_s0, 4  ;;  %s73_s26 = int_to_ptr.vmem [resolvable:$true] %s72_s26 }
  0x11   :  { %78 = dma.hbm_to_vmem [thread:$0]  %s71_s25, 1024, %s73_s26, [#allocation9], %s1902_s13, %s1902_s13, %s1903_s14  }
  0x12   :  { %1890 = dma.done.wait [#allocation3], 768  }
  0x13   :  { %1891 = vsyncadd [#allocation3], 4294966528 }
  0x14   :  { %1892 = dma.done.wait [#allocation6], 12320  }
  0x15   :  { %1893 = vsyncadd [#allocation6], 4294954976 }
  0x16   :  { %1894 = dma.done.wait [#allocation9], 3072  }
  0x17   :  { %1895 = vsyncadd [#allocation9], 4294964224  ;;  %v1180_v0 = vld [vmem:[#allocation5 + $0x70] sm:$0xf]  ;;  %v1617_v1 = vld [vmem:[#allocation5 + $0x74] sm:$0xf0] }
  0x18   :  { %v1244_v2 = vld [vmem:[#allocation5 + $0xf0] sm:$0xf]  ;;  %v1181_v3 = vor.u32 %v1617_v1, %v1180_v0  ;;  %v1633_v4 = vld [vmem:[#allocation5 + $0xf4] sm:$0xf0]  ;;  %v1172_v11 = vld [vmem:[#allocation5 + $0x60] sm:$0xf] }
  0x19   :  { %v1308_v5 = vld [vmem:[#allocation5 + $0x170] sm:$0xf]  ;;  %v1649_v6 = vld [vmem:[#allocation5 + $0x174] sm:$0xf0]  ;;  %v1245_v7 = vor.u32 %v1633_v4, %v1244_v2  ;;  %v1615_v13 = vld [vmem:[#allocation5 + $0x64] sm:$0xf0] }
  0x1a   :  { %v1309_v8 = vor.u32 %v1649_v6, %v1308_v5  ;;  %v1372_v9 = vld [vmem:[#allocation5 + $0x1f0] sm:$0xf]  ;;  %v1665_v10 = vld [vmem:[#allocation5 + $0x1f4] sm:$0xf0]  ;;  %701 = vmatpush.bf16.msra.mxu0 %v1181_v3  ;;  %v1236_v14 = vld [vmem:[#allocation5 + $0xe0] sm:$0xf]  ;;  %v1173_v16 = vor.u32 %v1615_v13, %v1172_v11 }
  0x1b   :  { %v1373_v12 = vor.u32 %v1665_v10, %v1372_v9  ;;  %v1631_v15 = vld [vmem:[#allocation5 + $0xe4] sm:$0xf0]  ;;  %714 = vmatpush.bf16.msra.mxu1 %v1245_v7  ;;  %v1300_v18 = vld [vmem:[#allocation5 + $0x160] sm:$0xf]  ;;  %v1164_v23 = vld [vmem:[#allocation5 + $0x50] sm:$0xf] }
  0x1c   :  { %727 = vmatpush.bf16.msra.mxu2 %v1309_v8  ;;  %v1237_v17 = vor.u32 %v1631_v15, %v1236_v14  ;;  %v1647_v19 = vld [vmem:[#allocation5 + $0x164] sm:$0xf0]  ;;  %v1364_v20 = vld [vmem:[#allocation5 + $0x1e0] sm:$0xf]  ;;  %v1613_v24 = vld [vmem:[#allocation5 + $0x54] sm:$0xf0] }
  0x1d   :  { %740 = vmatpush.bf16.msra.mxu3 %v1373_v12  ;;  %v1301_v21 = vor.u32 %v1647_v19, %v1300_v18  ;;  %v1663_v22 = vld [vmem:[#allocation5 + $0x1e4] sm:$0xf0]  ;;  %v1228_v26 = vld [vmem:[#allocation5 + $0xd0] sm:$0xf]  ;;  %v1629_v27 = vld [vmem:[#allocation5 + $0xd4] sm:$0xf0]  ;;  %v1165_v29 = vor.u32 %v1613_v24, %v1164_v23 }
  0x1e   :  { %v1365_v25 = vor.u32 %v1663_v22, %v1364_v20  ;;  %v1292_v28 = vld [vmem:[#allocation5 + $0x150] sm:$0xf]  ;;  %702 = vmatpush.bf16.msra.mxu0 %v1173_v16  ;;  %v1645_v30 = vld [vmem:[#allocation5 + $0x154] sm:$0xf0]  ;;  %v1229_v33 = vor.u32 %v1629_v27, %v1228_v26  ;;  %v1156_v35 = vld [vmem:[#allocation5 + $0x40] sm:$0xf] }
  0x1f   :  { %v1356_v31 = vld [vmem:[#allocation5 + $0x1d0] sm:$0xf]  ;;  %v1661_v32 = vld [vmem:[#allocation5 + $0x1d4] sm:$0xf0]  ;;  %715 = vmatpush.bf16.msra.mxu1 %v1237_v17  ;;  %v1293_v34 = vor.u32 %v1645_v30, %v1292_v28  ;;  %v1611_v36 = vld [vmem:[#allocation5 + $0x44] sm:$0xf0] }
  0x20   :  { %728 = vmatpush.bf16.msra.mxu2 %v1301_v21  ;;  %v1220_v37 = vld [vmem:[#allocation5 + $0xc0] sm:$0xf]  ;;  %v1357_v38 = vor.u32 %v1661_v32, %v1356_v31  ;;  %v1627_v39 = vld [vmem:[#allocation5 + $0xc4] sm:$0xf0]  ;;  %v1157_v44 = vor.u32 %v1611_v36, %v1156_v35  ;;  %v1148_v47 = vld [vmem:[#allocation5 + $0x30] sm:$0xf] }
  0x21   :  { %741 = vmatpush.bf16.msra.mxu3 %v1365_v25  ;;  %v1284_v40 = vld [vmem:[#allocation5 + $0x140] sm:$0xf]  ;;  %v1643_v41 = vld [vmem:[#allocation5 + $0x144] sm:$0xf0]  ;;  %v1221_v45 = vor.u32 %v1627_v39, %v1220_v37  ;;  %v1609_v48 = vld [vmem:[#allocation5 + $0x34] sm:$0xf0] }
  0x22   :  { %v1348_v42 = vld [vmem:[#allocation5 + $0x1c0] sm:$0xf]  ;;  %v1659_v43 = vld [vmem:[#allocation5 + $0x1c4] sm:$0xf0]  ;;  %703 = vmatpush.bf16.msra.mxu0 %v1165_v29  ;;  %v1285_v46 = vor.u32 %v1643_v41, %v1284_v40  ;;  %v1212_v49 = vld [vmem:[#allocation5 + $0xb0] sm:$0xf]  ;;  %v1149_v56 = vor.u32 %v1609_v48, %v1148_v47 }
  0x23   :  { %716 = vmatpush.bf16.msra.mxu1 %v1229_v33  ;;  %v1349_v50 = vor.u32 %v1659_v43, %v1348_v42  ;;  %v1625_v51 = vld [vmem:[#allocation5 + $0xb4] sm:$0xf0]  ;;  %v1276_v52 = vld [vmem:[#allocation5 + $0x130] sm:$0xf]  ;;  %v1140_v59 = vld [vmem:[#allocation5 + $0x20] sm:$0xf] }
  0x24   :  { %729 = vmatpush.bf16.msra.mxu2 %v1293_v34  ;;  %v1641_v53 = vld [vmem:[#allocation5 + $0x134] sm:$0xf0]  ;;  %v1340_v54 = vld [vmem:[#allocation5 + $0x1b0] sm:$0xf]  ;;  %v1213_v57 = vor.u32 %v1625_v51, %v1212_v49  ;;  %v1607_v60 = vld [vmem:[#allocation5 + $0x24] sm:$0xf0] }
  0x25   :  { %742 = vmatpush.bf16.msra.mxu3 %v1357_v38  ;;  %v1657_v55 = vld [vmem:[#allocation5 + $0x1b4] sm:$0xf0]  ;;  %v1277_v58 = vor.u32 %v1641_v53, %v1276_v52  ;;  %v1204_v61 = vld [vmem:[#allocation5 + $0xa0] sm:$0xf]  ;;  %v1623_v63 = vld [vmem:[#allocation5 + $0xa4] sm:$0xf0]  ;;  %v1141_v4 = vor.u32 %v1607_v60, %v1140_v59 }
  0x26   :  { %704 = vmatpush.bf16.msra.mxu0 %v1157_v44  ;;  %v1341_v62 = vor.u32 %v1657_v55, %v1340_v54  ;;  %v1268_v0 = vld [vmem:[#allocation5 + $0x120] sm:$0xf]  ;;  %v1639_v1 = vld [vmem:[#allocation5 + $0x124] sm:$0xf0]  ;;  %v1205_v5 = vor.u32 %v1623_v63, %v1204_v61  ;;  %v1132_v7 = vld [vmem:[#allocation5 + $0x10] sm:$0xf] }
  0x27   :  { %717 = vmatpush.bf16.msra.mxu1 %v1221_v45  ;;  %v1332_v2 = vld [vmem:[#allocation5 + $0x1a0] sm:$0xf]  ;;  %v1655_v3 = vld [vmem:[#allocation5 + $0x1a4] sm:$0xf0]  ;;  %v1269_v6 = vor.u32 %v1639_v1, %v1268_v0  ;;  %v1605_v8 = vld [vmem:[#allocation5 + $0x14] sm:$0xf0] }
  0x28   :  { %730 = vmatpush.bf16.msra.mxu2 %v1285_v46  ;;  %v1196_v9 = vld [vmem:[#allocation5 + $0x90] sm:$0xf]  ;;  %v1333_v10 = vor.u32 %v1655_v3, %v1332_v2  ;;  %v1621_v11 = vld [vmem:[#allocation5 + $0x94] sm:$0xf0]  ;;  %v1133_v16 = vor.u32 %v1605_v8, %v1132_v7  ;;  %v1124_v17 = vld [vmem:[#allocation5] sm:$0xf] }
  0x29   :  { %743 = vmatpush.bf16.msra.mxu3 %v1349_v50  ;;  %v1260_v12 = vld [vmem:[#allocation5 + $0x110] sm:$0xf]  ;;  %v1637_v13 = vld [vmem:[#allocation5 + $0x114] sm:$0xf0]  ;;  %v1603_v18 = vld [vmem:[#allocation5 + $0x4] sm:$0xf0]  ;;  %v1197_v19 = vor.u32 %v1621_v11, %v1196_v9 }
  0x2a   :  { %705 = vmatpush.bf16.msra.mxu0 %v1149_v56  ;;  %v1324_v14 = vld [vmem:[#allocation5 + $0x190] sm:$0xf]  ;;  %v1653_v15 = vld [vmem:[#allocation5 + $0x194] sm:$0xf0]  ;;  %v1261_v20 = vor.u32 %v1637_v13, %v1260_v12  ;;  %v1188_v21 = vld [vmem:[#allocation5 + $0x80] sm:$0xf]  ;;  %v1125_v31 = vor.u32 %v1603_v18, %v1124_v17 }
  0x2b   :  { %718 = vmatpush.bf16.msra.mxu1 %v1213_v57  ;;  %v1619_v22 = vld [vmem:[#allocation5 + $0x84] sm:$0xf0]  ;;  %v1252_v23 = vld [vmem:[#allocation5 + $0x100] sm:$0xf]  ;;  %v1325_v24 = vor.u32 %v1653_v15, %v1324_v14  ;;  %v1436_v28 = vld [vmem:[#allocation5 + $0x270] sm:$0xf] }
  0x2c   :  { %731 = vmatpush.bf16.msra.mxu2 %v1277_v58  ;;  %v1635_v25 = vld [vmem:[#allocation5 + $0x104] sm:$0xf0]  ;;  %v1316_v26 = vld [vmem:[#allocation5 + $0x180] sm:$0xf]  ;;  %v1681_v29 = vld [vmem:[#allocation5 + $0x274] sm:$0xf0]  ;;  %v1189_v35 = vor.u32 %v1619_v22, %v1188_v21 }
  0x2d   :  { %744 = vmatpush.bf16.msra.mxu3 %v1341_v62  ;;  %v1651_v27 = vld [vmem:[#allocation5 + $0x184] sm:$0xf0]  ;;  %v1500_v30 = vld [vmem:[#allocation5 + $0x2f0] sm:$0xf]  ;;  %v1697_v32 = vld [vmem:[#allocation5 + $0x2f4] sm:$0xf0]  ;;  %v1253_v36 = vor.u32 %v1635_v25, %v1252_v23  ;;  %v1437_v40 = vor.u32 %v1681_v29, %v1436_v28 }
  0x2e   :  { %706 = vmatpush.bf16.msra.mxu0 %v1141_v4  ;;  %v1616_v33 = vld [vmem:[#allocation5 + $0x74] sm:$0xf]  ;;  %v1182_v34 = vld [vmem:[#allocation5 + $0x78] sm:$0xf0]  ;;  %v1317_v39 = vor.u32 %v1651_v27, %v1316_v26  ;;  %v1501_v41 = vor.u32 %v1697_v32, %v1500_v30  ;;  %v1428_v43 = vld [vmem:[#allocation5 + $0x260] sm:$0xf] }
  0x2f   :  { %719 = vmatpush.bf16.msra.mxu1 %v1205_v5  ;;  %v1632_v37 = vld [vmem:[#allocation5 + $0xf4] sm:$0xf]  ;;  %v1246_v38 = vld [vmem:[#allocation5 + $0xf8] sm:$0xf0]  ;;  %v1185_v42 = vor.u32 %v1616_v33, %v1182_v34  ;;  %v1679_v44 = vld [vmem:[#allocation5 + $0x264] sm:$0xf0] }
  0x30   :  { %732 = vmatpush.bf16.msra.mxu2 %v1269_v6  ;;  %v1492_v45 = vld [vmem:[#allocation5 + $0x2e0] sm:$0xf]  ;;  %v1249_v46 = vor.u32 %v1632_v37, %v1246_v38  ;;  %v1695_v47 = vld [vmem:[#allocation5 + $0x2e4] sm:$0xf0]  ;;  %v1614_v48 = vld [vmem:[#allocation5 + $0x64] sm:$0xf]  ;;  %v1429_v53 = vor.u32 %v1679_v44, %v1428_v43 }
  0x31   :  { %745 = vmatpush.bf16.msra.mxu3 %v1333_v10  ;;  %v1174_v49 = vld [vmem:[#allocation5 + $0x68] sm:$0xf0]  ;;  %v1630_v50 = vld [vmem:[#allocation5 + $0xe4] sm:$0xf]  ;;  %v101_v52 = vld [vmem:[#allocation2] sm:$0xff]  ;;  %v1493_v56 = vor.u32 %v1695_v47, %v1492_v45  ;;  %s1907_s29 = smov [#allocation11]  }
  0x32   :  { %707 = vmatpush.bf16.msra.mxu0 %v1133_v16  ;;  %v1238_v51 = vld [vmem:[#allocation5 + $0xe8] sm:$0xf0]  ;;  %v1420_v54 = vld [vmem:[#allocation5 + $0x250] sm:$0xf]  ;;  %v1677_v55 = vld [vmem:[#allocation5 + $0x254] sm:$0xf0]  ;;  %1734 = vtanh.f32 %v101_v52  ;;  %v1177_v57 = vor.u32 %v1614_v48, %v1174_v49 }
  0x33   :  { %720 = vmatpush.bf16.msra.mxu1 %v1197_v19  ;;  %v1484_v58 = vld [vmem:[#allocation5 + $0x2d0] sm:$0xf]  ;;  %v1693_v59 = vld [vmem:[#allocation5 + $0x2d4] sm:$0xf0]  ;;  %v1612_v60 = vld [vmem:[#allocation5 + $0x54] sm:$0xf]  ;;  %v1241_v61 = vor.u32 %v1630_v50, %v1238_v51  ;;  %v1421_v3 = vor.u32 %v1677_v55, %v1420_v54 }
  0x34   :  { %733 = vmatpush.bf16.msra.mxu2 %v1261_v20  ;;  %v1166_v62 = vld [vmem:[#allocation5 + $0x58] sm:$0xf0]  ;;  %v103_v0 = vld [vmem:[#allocation2 + $0x10] sm:$0xff]  ;;  %v1628_v1 = vld [vmem:[#allocation5 + $0xd4] sm:$0xf]  ;;  %v1485_v5 = vor.u32 %v1693_v59, %v1484_v58  ;;  %s1108_s30 = sshll.u32 %s1907_s29, 4  ;;  %s1109_s30 = int_to_ptr.vmem [resolvable:$true] %s1108_s30 }
  0x35   :  { %746 = vmatpush.bf16.msra.mxu3 %v1325_v24  ;;  %v102_v63 = vld [vmem:[#allocation2 + $0x8] sm:$0xff]  ;;  %v1412_v4 = vld [vmem:[#allocation5 + $0x240] sm:$0xf]  ;;  %v1169_v6 = vor.u32 %v1612_v60, %v1166_v62  ;;  %v1675_v7 = vld [vmem:[#allocation5 + $0x244] sm:$0xf0]  ;;  %s1110_s10 = sshll.u32 %s2003_s7, 4  ;;  %s1111_s10 = int_to_ptr.hbm [resolvable:$true] %s1110_s10 }
  0x36   :  { %708 = vmatpush.bf16.msra.mxu0 %v1125_v31  ;;  %v1230_v2 = vld [vmem:[#allocation5 + $0xd8] sm:$0xf0]  ;;  %1736 = vtanh.f32 %v102_v63  ;;  %v1476_v8 = vld [vmem:[#allocation5 + $0x2c0] sm:$0xf]  ;;  %v104_v9 = vld [vmem:[#allocation2 + $0x18] sm:$0xff]  ;;  %v1413_v18 = vor.u32 %v1675_v7, %v1412_v4 }
  0x37   :  { %721 = vmatpush.bf16.msra.mxu1 %v1189_v35  ;;  %1738 = vtanh.f32 %v103_v0  ;;  %v1233_v11 = vor.u32 %v1628_v1, %v1230_v2  ;;  %v1691_v12 = vld [vmem:[#allocation5 + $0x2c4] sm:$0xf0]  ;;  %v1610_v13 = vld [vmem:[#allocation5 + $0x44] sm:$0xf]  ;;  %v1158_v14 = vld [vmem:[#allocation5 + $0x48] sm:$0xf0] }
  0x38   :  { %734 = vmatpush.bf16.msra.mxu2 %v1253_v36  ;;  %v1735_v10 = vpop.eup %1734  ;;  %1740 = vtanh.f32 %v104_v9  ;;  %v1626_v15 = vld [vmem:[#allocation5 + $0xc4] sm:$0xf]  ;;  %v1222_v16 = vld [vmem:[#allocation5 + $0xc8] sm:$0xf0]  ;;  %v1477_v20 = vor.u32 %v1691_v12, %v1476_v8  ;;  %v1161_v21 = vor.u32 %v1610_v13, %v1158_v14  ;;  %v1404_v22 = vld [vmem:[#allocation5 + $0x230] sm:$0xf] }
  0x39   :  { %747 = vmatpush.bf16.msra.mxu3 %v1317_v39  ;;  %v1963_v17 = vpack.c.bf16 %v1735_v10, %v1735_v10  ;;  %v1673_v23 = vld [vmem:[#allocation5 + $0x234] sm:$0xf0]  ;;  %v1468_v24 = vld [vmem:[#allocation5 + $0x2b0] sm:$0xf]  ;;  %v1225_v26 = vor.u32 %v1626_v15, %v1222_v16  ;;  %v1608_v28 = vld [vmem:[#allocation5 + $0x34] sm:$0xf] }
  0x3a   :  { %753 = vmatpush.bf16.msrb.mxu0 %v1437_v40  ;;  %v1689_v27 = vld [vmem:[#allocation5 + $0x2b4] sm:$0xf0]  ;;  %v1150_v29 = vld [vmem:[#allocation5 + $0x38] sm:$0xf0]  ;;  %v1624_v31 = vld [vmem:[#allocation5 + $0xb4] sm:$0xf]  ;;  %v1405_v35 = vor.u32 %v1673_v23, %v1404_v22 }
  0x3b   :  { %766 = vmatpush.bf16.msrb.mxu1 %v1501_v41  ;;  %709 = vmatmul.bf16.vlgmr.msra.gmra.mxu0 %v1963_v17  ;;  %v1214_v32 = vld [vmem:[#allocation5 + $0xb8] sm:$0xf0]  ;;  %v1469_v36 = vor.u32 %v1689_v27, %v1468_v24  ;;  %v1153_v37 = vor.u32 %v1608_v28, %v1150_v29  ;;  %v1396_v38 = vld [vmem:[#allocation5 + $0x220] sm:$0xf]  ;;  %v1671_v39 = vld [vmem:[#allocation5 + $0x224] sm:$0xf0] }
  0x3c   :  { %779 = vmatpush.bf16.msrb.mxu2 %v1185_v42  ;;  %v1737_v19 = vpop.eup %1736  ;;  %v1460_v40 = vld [vmem:[#allocation5 + $0x2a0] sm:$0xf]  ;;  %v1217_v42 = vor.u32 %v1624_v31, %v1214_v32  ;;  %v1687_v43 = vld [vmem:[#allocation5 + $0x2a4] sm:$0xf0]  ;;  %v1606_v44 = vld [vmem:[#allocation5 + $0x24] sm:$0xf]  ;;  %v1397_v48 = vor.u32 %v1671_v39, %v1396_v38 }
  0x3d   :  { %792 = vmatpush.bf16.msrb.mxu3 %v1249_v46  ;;  %v1739_v25 = vpop.eup %1738  ;;  %v1966_v30 = vpack.c.bf16 %v1737_v19, %v1737_v19  ;;  %v1142_v45 = vld [vmem:[#allocation5 + $0x28] sm:$0xf0]  ;;  %v1622_v46 = vld [vmem:[#allocation5 + $0xa4] sm:$0xf]  ;;  %v1388_v49 = vld [vmem:[#allocation5 + $0x210] sm:$0xf]  ;;  %v1461_v51 = vor.u32 %v1687_v43, %v1460_v40 }
  0x3e   :  { %754 = vmatpush.bf16.msrb.mxu0 %v1429_v53  ;;  %v1968_v33 = vpack.c.bf16 %v1739_v25, %v1739_v25  ;;  %v1741_v34 = vpop.eup %1740  ;;  %v1206_v47 = vld [vmem:[#allocation5 + $0xa8] sm:$0xf0]  ;;  %v105_v50 = vld [vmem:[#allocation2 + $0x20] sm:$0xff]  ;;  %v1145_v52 = vor.u32 %v1606_v44, %v1142_v45  ;;  %v1669_v53 = vld [vmem:[#allocation5 + $0x214] sm:$0xf0] }
  0x3f   :  { %767 = vmatpush.bf16.msrb.mxu1 %v1493_v56  ;;  %v1971_v41 = vpack.c.bf16 %v1741_v34, %v1741_v34  ;;  %v1452_v54 = vld [vmem:[#allocation5 + $0x290] sm:$0xf]  ;;  %v106_v55 = vld [vmem:[#allocation2 + $0x28] sm:$0xff]  ;;  %v1209_v56 = vor.u32 %v1622_v46, %v1206_v47  ;;  %v1604_v58 = vld [vmem:[#allocation5 + $0x14] sm:$0xf]  ;;  %1742 = vtanh.f32 %v105_v50  ;;  %v1389_v62 = vor.u32 %v1669_v53, %v1388_v49 }
  0x40   :  { %780 = vmatpush.bf16.msrb.mxu2 %v1177_v57  ;;  %722 = vmatmul.bf16.vlgmr.msra.gmra.mxu1 %v1966_v30  ;;  %v1685_v57 = vld [vmem:[#allocation5 + $0x294] sm:$0xf0]  ;;  %v1134_v59 = vld [vmem:[#allocation5 + $0x18] sm:$0xf0]  ;;  %v1620_v60 = vld [vmem:[#allocation5 + $0x94] sm:$0xf]  ;;  %1744 = vtanh.f32 %v106_v55 }
  0x41   :  { %793 = vmatpush.bf16.msrb.mxu3 %v1241_v61  ;;  %735 = vmatmul.bf16.vlgmr.msra.gmra.mxu2 %v1968_v33  ;;  %v1198_v61 = vld [vmem:[#allocation5 + $0x98] sm:$0xf0]  ;;  %v1380_v63 = vld [vmem:[#allocation5 + $0x200] sm:$0xf]  ;;  %v1667_v0 = vld [vmem:[#allocation5 + $0x204] sm:$0xf0]  ;;  %v1453_v1 = vor.u32 %v1685_v57, %v1452_v54  ;;  %v1137_v2 = vor.u32 %v1604_v58, %v1134_v59 }
  0x42   :  { %755 = vmatpush.bf16.msrb.mxu0 %v1421_v3  ;;  %748 = vmatmul.bf16.vlgmr.msra.gmra.mxu3 %v1971_v41  ;;  %v1444_v3 = vld [vmem:[#allocation5 + $0x280] sm:$0xf]  ;;  %v1683_v4 = vld [vmem:[#allocation5 + $0x284] sm:$0xf0]  ;;  %v1126_v7 = vld [vmem:[#allocation5 + $0x8] sm:$0xf0]  ;;  %v1381_v13 = vor.u32 %v1667_v0, %v1380_v63 }
  0x43   :  { %768 = vmatpush.bf16.msrb.mxu1 %v1485_v5  ;;  %v1602_v5 = vld [vmem:[#allocation5 + $0x4] sm:$0xf]  ;;  %v1190_v9 = vld [vmem:[#allocation5 + $0x88] sm:$0xf0]  ;;  %v1648_v10 = vld [vmem:[#allocation5 + $0x174] sm:$0xf]  ;;  %v1445_v19 = vor.u32 %v1683_v4, %v1444_v3 }
  0x44   :  { %781 = vmatpush.bf16.msrb.mxu2 %v1169_v6  ;;  %v1201_v6 = vor.u32 %v1620_v60, %v1198_v61  ;;  %v1618_v8 = vld [vmem:[#allocation5 + $0x84] sm:$0xf]  ;;  %v1664_v12 = vld [vmem:[#allocation5 + $0x1f4] sm:$0xf]  ;;  %v1374_v14 = vld [vmem:[#allocation5 + $0x1f8] sm:$0xf0] }
  0x45   :  { %794 = vmatpush.bf16.msrb.mxu3 %v1233_v11  ;;  %v1310_v11 = vld [vmem:[#allocation5 + $0x178] sm:$0xf0]  ;;  %v1680_v15 = vld [vmem:[#allocation5 + $0x274] sm:$0xf]  ;;  %v1193_v24 = vor.u32 %v1618_v8, %v1190_v9  ;;  %v1646_v28 = vld [vmem:[#allocation5 + $0x164] sm:$0xf] }
  0x46   :  { %756 = vmatpush.bf16.msrb.mxu0 %v1413_v18  ;;  %v1438_v16 = vld [vmem:[#allocation5 + $0x278] sm:$0xf0]  ;;  %v1743_v18 = vpop.eup %1742  ;;  %v1313_v25 = vor.u32 %v1648_v10, %v1310_v11  ;;  %v1302_v29 = vld [vmem:[#allocation5 + $0x168] sm:$0xf0]  ;;  %v1662_v31 = vld [vmem:[#allocation5 + $0x1e4] sm:$0xf] }
  0x47   :  { %769 = vmatpush.bf16.msrb.mxu1 %v1477_v20  ;;  %v1129_v20 = vor.u32 %v1602_v5, %v1126_v7  ;;  %v1502_v22 = vld [vmem:[#allocation5 + $0x2f8] sm:$0xf0]  ;;  %v1745_v23 = vpop.eup %1744  ;;  %v1441_v27 = vor.u32 %v1680_v15, %v1438_v16  ;;  %v1975_v34 = vpack.c.bf16 %v1743_v18, %v1743_v18  ;;  %v1694_v39 = vld [vmem:[#allocation5 + $0x2e4] sm:$0xf]  ;;  %v1494_v40 = vld [vmem:[#allocation5 + $0x2e8] sm:$0xf0] }
  0x48   :  { %782 = vmatpush.bf16.msrb.mxu2 %v1161_v21  ;;  %v1696_v21 = vld [vmem:[#allocation5 + $0x2f4] sm:$0xf]  ;;  %v1977_v38 = vpack.c.bf16 %v1745_v23, %v1745_v23  ;;  %v1294_v46 = vld [vmem:[#allocation5 + $0x158] sm:$0xf0]  ;;  %v1642_v57 = vld [vmem:[#allocation5 + $0x144] sm:$0xf] }
  0x49   :  { %795 = vmatpush.bf16.msrb.mxu3 %v1225_v26  ;;  %v1377_v26 = vor.u32 %v1664_v12, %v1374_v14  ;;  %v1505_v32 = vor.u32 %v1696_v21, %v1502_v22  ;;  %v1644_v45 = vld [vmem:[#allocation5 + $0x154] sm:$0xf]  ;;  %v1358_v49 = vld [vmem:[#allocation5 + $0x1d8] sm:$0xf0]  ;;  %v1286_v58 = vld [vmem:[#allocation5 + $0x148] sm:$0xf0] }
  0x4a   :  { %757 = vmatpush.bf16.msrb.mxu0 %v1405_v35  ;;  %v1366_v35 = vld [vmem:[#allocation5 + $0x1e8] sm:$0xf0]  ;;  %v1660_v47 = vld [vmem:[#allocation5 + $0x1d4] sm:$0xf]  ;;  %v1486_v53 = vld [vmem:[#allocation5 + $0x2d8] sm:$0xf0]  ;;  %v1297_v54 = vor.u32 %v1644_v45, %v1294_v46 }
  0x4b   :  { %770 = vmatpush.bf16.msrb.mxu1 %v1469_v36  ;;  %v1678_v36 = vld [vmem:[#allocation5 + $0x264] sm:$0xf]  ;;  %v1369_v43 = vor.u32 %v1662_v31, %v1366_v35  ;;  %v1676_v50 = vld [vmem:[#allocation5 + $0x254] sm:$0xf]  ;;  %v1361_v55 = vor.u32 %v1660_v47, %v1358_v49  ;;  %v1350_v61 = vld [vmem:[#allocation5 + $0x1c8] sm:$0xf0] }
  0x4c   :  { %783 = vmatpush.bf16.msrb.mxu2 %v1153_v37  ;;  %v1430_v37 = vld [vmem:[#allocation5 + $0x268] sm:$0xf0]  ;;  %v1658_v59 = vld [vmem:[#allocation5 + $0x1c4] sm:$0xf]  ;;  %v1640_v3 = vld [vmem:[#allocation5 + $0x134] sm:$0xf] }
  0x4d   :  { %796 = vmatpush.bf16.msrb.mxu3 %v1217_v42  ;;  %v1305_v42 = vor.u32 %v1646_v28, %v1302_v29  ;;  %v1433_v44 = vor.u32 %v1678_v36, %v1430_v37  ;;  %v1414_v63 = vld [vmem:[#allocation5 + $0x248] sm:$0xf0]  ;;  %v1690_v0 = vld [vmem:[#allocation5 + $0x2c4] sm:$0xf]  ;;  %v1278_v4 = vld [vmem:[#allocation5 + $0x138] sm:$0xf0] }
  0x4e   :  { %758 = vmatpush.bf16.msrb.mxu0 %v1397_v48  ;;  %v1497_v48 = vor.u32 %v1694_v39, %v1494_v40  ;;  %v1656_v5 = vld [vmem:[#allocation5 + $0x1b4] sm:$0xf]  ;;  %v1342_v7 = vld [vmem:[#allocation5 + $0x1b8] sm:$0xf0]  ;;  %v1281_v12 = vor.u32 %v1640_v3, %v1278_v4  ;;  %v1638_v15 = vld [vmem:[#allocation5 + $0x124] sm:$0xf] }
  0x4f   :  { %771 = vmatpush.bf16.msrb.mxu1 %v1461_v51  ;;  %v1422_v51 = vld [vmem:[#allocation5 + $0x258] sm:$0xf0]  ;;  %v1672_v8 = vld [vmem:[#allocation5 + $0x234] sm:$0xf]  ;;  %v1270_v16 = vld [vmem:[#allocation5 + $0x128] sm:$0xf0] }
  0x50   :  { %784 = vmatpush.bf16.msrb.mxu2 %v1145_v52  ;;  %v1692_v52 = vld [vmem:[#allocation5 + $0x2d4] sm:$0xf]  ;;  %v1406_v9 = vld [vmem:[#allocation5 + $0x238] sm:$0xf0]  ;;  %v1654_v18 = vld [vmem:[#allocation5 + $0x1a4] sm:$0xf] }
  0x51   :  { %797 = vmatpush.bf16.msrb.mxu3 %v1209_v56  ;;  %v1425_v56 = vor.u32 %v1676_v50, %v1422_v51  ;;  %v1489_v60 = vor.u32 %v1692_v52, %v1486_v53  ;;  %v1688_v10 = vld [vmem:[#allocation5 + $0x2b4] sm:$0xf]  ;;  %v1470_v11 = vld [vmem:[#allocation5 + $0x2b8] sm:$0xf0]  ;;  %v1409_v14 = vor.u32 %v1672_v8, %v1406_v9  ;;  %v1670_v21 = vld [vmem:[#allocation5 + $0x224] sm:$0xf] }
  0x52   :  { %759 = vmatpush.bf16.msrb.mxu0 %v1389_v62  ;;  %v1674_v62 = vld [vmem:[#allocation5 + $0x244] sm:$0xf]  ;;  %v1398_v22 = vld [vmem:[#allocation5 + $0x228] sm:$0xf0]  ;;  %v1636_v28 = vld [vmem:[#allocation5 + $0x114] sm:$0xf] }
  0x53   :  { %772 = vmatpush.bf16.msrb.mxu1 %v1453_v1  ;;  %v1289_v1 = vor.u32 %v1642_v57, %v1286_v58  ;;  %v1686_v23 = vld [vmem:[#allocation5 + $0x2a4] sm:$0xf]  ;;  %v1262_v29 = vld [vmem:[#allocation5 + $0x118] sm:$0xf0]  ;;  %v1652_v31 = vld [vmem:[#allocation5 + $0x194] sm:$0xf] }
  0x54   :  { %785 = vmatpush.bf16.msrb.mxu2 %v1137_v2  ;;  %v1353_v2 = vor.u32 %v1658_v59, %v1350_v61  ;;  %v1326_v35 = vld [vmem:[#allocation5 + $0x198] sm:$0xf0]  ;;  %v1668_v36 = vld [vmem:[#allocation5 + $0x214] sm:$0xf]  ;;  %v1634_v45 = vld [vmem:[#allocation5 + $0x104] sm:$0xf] }
  0x55   :  { %798 = vmatpush.bf16.msrb.mxu3 %v1201_v6  ;;  %v1390_v37 = vld [vmem:[#allocation5 + $0x218] sm:$0xf0]  ;;  %v1684_v39 = vld [vmem:[#allocation5 + $0x294] sm:$0xf]  ;;  %v1254_v46 = vld [vmem:[#allocation5 + $0x108] sm:$0xf0] }
  0x56   :  { %760 = vmatpush.bf16.msrb.mxu0 %v1381_v13  ;;  %v1345_v13 = vor.u32 %v1656_v5, %v1342_v7  ;;  %v1454_v40 = vld [vmem:[#allocation5 + $0x298] sm:$0xf0]  ;;  %v1650_v47 = vld [vmem:[#allocation5 + $0x184] sm:$0xf]  ;;  %v1318_v49 = vld [vmem:[#allocation5 + $0x188] sm:$0xf0] }
  0x57   :  { %773 = vmatpush.bf16.msrb.mxu1 %v1445_v19  ;;  %v1473_v19 = vor.u32 %v1688_v10, %v1470_v11  ;;  %v1666_v50 = vld [vmem:[#allocation5 + $0x204] sm:$0xf]  ;;  %v1382_v51 = vld [vmem:[#allocation5 + $0x208] sm:$0xf0]  ;;  %v1705_v58 = vld [vmem:[#allocation8 + $0x38] sm:$0xff] }
  0x58   :  { %786 = vmatpush.bf16.msrb.mxu2 %v1129_v20  ;;  %v1334_v20 = vld [vmem:[#allocation5 + $0x1a8] sm:$0xf0]  ;;  %v1682_v52 = vld [vmem:[#allocation5 + $0x284] sm:$0xf]  ;;  %v1704_v59 = vld [vmem:[#allocation8 + $0x30] sm:$0xff] }
  0x59   :  { %799 = vmatpush.bf16.msrb.mxu3 %v1193_v24  ;;  %761 = vmatmul.bf16.vlgmr.msrb.gmra.mxu0 %v1975_v34  ;;  %v1462_v24 = vld [vmem:[#allocation5 + $0x2a8] sm:$0xf0]  ;;  %v1702_v61 = vld [vmem:[#allocation8 + $0x20] sm:$0xff] }
  0x5a   :  { %805 = vmatpush.bf16.msra.mxu0 %v1313_v25  ;;  %774 = vmatmul.bf16.vlgmr.msrb.gmra.mxu1 %v1977_v38  ;;  %v1273_v25 = vor.u32 %v1638_v15, %v1270_v16  ;;  %v1446_v53 = vld [vmem:[#allocation5 + $0x288] sm:$0xf0]  ;;  %v1710_v7 = vld [vmem:[#allocation8 + $0x60] sm:$0xff]  ;;  %v1708_v16 = vld [vmem:[#allocation8 + $0x50] sm:$0xff] }
  0x5b   :  { %818 = vmatpush.bf16.msra.mxu1 %v1377_v26  ;;  %787 = vmatmul.bf16.vlgmr.msrb.gmra.mxu2 %v1963_v17  ;;  %v1478_v17 = vld [vmem:[#allocation5 + $0x2c8] sm:$0xf0]  ;;  %v1337_v26 = vor.u32 %v1654_v18, %v1334_v20  ;;  %v1449_v57 = vor.u32 %v1682_v52, %v1446_v53  ;;  %v1721_v53 = vld [vmem:[#allocation10 + $0x38] sm:$0xff] }
  0x5c   :  { %831 = vmatpush.bf16.msra.mxu2 %v1441_v27  ;;  %800 = vmatmul.bf16.vlgmr.msrb.gmra.mxu3 %v1966_v30  ;;  %v1417_v30 = vor.u32 %v1674_v62, %v1414_v63  ;;  %v1481_v6 = vor.u32 %v1690_v0, %v1478_v17  ;;  %v1401_v27 = vor.u32 %v1670_v21, %v1398_v22  ;;  %v1701_v62 = vld [vmem:[#allocation8 + $0x18] sm:$0xff]  ;;  %v1700_v63 = vld [vmem:[#allocation8 + $0x10] sm:$0xff]  ;;  %v1699_v0 = vld [vmem:[#allocation8 + $0x8] sm:$0xff] }
  0x5d   :  { %844 = vmatpush.bf16.msra.mxu3 %v1505_v32  ;;  %v1465_v32 = vor.u32 %v1686_v23, %v1462_v24  ;;  %v1698_v17 = vld [vmem:[#allocation8] sm:$0xff]  ;;  %v1707_v22 = vld [vmem:[#allocation8 + $0x48] sm:$0xff] }
  0x5e   :  { %806 = vmatpush.bf16.msra.mxu0 %v1305_v42  ;;  %v1265_v42 = vor.u32 %v1636_v28, %v1262_v29  ;;  %v1706_v28 = vld [vmem:[#allocation8 + $0x40] sm:$0xff] }
  0x5f   :  { %819 = vmatpush.bf16.msra.mxu1 %v1369_v43  ;;  %v1329_v43 = vor.u32 %v1652_v31, %v1326_v35 }
  0x60   :  { %832 = vmatpush.bf16.msra.mxu2 %v1433_v44  ;;  %v1393_v44 = vor.u32 %v1668_v36, %v1390_v37 }
  0x61   :  { %845 = vmatpush.bf16.msra.mxu3 %v1497_v48  ;;  %v1457_v48 = vor.u32 %v1684_v39, %v1454_v40 }
  0x62   :  { %807 = vmatpush.bf16.msra.mxu0 %v1297_v54  ;;  %v1257_v54 = vor.u32 %v1634_v45, %v1254_v46 }
  0x63   :  { %820 = vmatpush.bf16.msra.mxu1 %v1361_v55  ;;  %v1321_v55 = vor.u32 %v1650_v47, %v1318_v49 }
  0x64   :  { %833 = vmatpush.bf16.msra.mxu2 %v1425_v56  ;;  %v1385_v56 = vor.u32 %v1666_v50, %v1382_v51 }
  0x65   :  { %846 = vmatpush.bf16.msra.mxu3 %v1489_v60  ;;  %v1703_v60 = vld [vmem:[#allocation8 + $0x28] sm:$0xff] }
  0x66   :  { %808 = vmatpush.bf16.msra.mxu0 %v1289_v1 }
  0x67   :  { %821 = vmatpush.bf16.msra.mxu1 %v1353_v2 }
  0x68   :  { %834 = vmatpush.bf16.msra.mxu2 %v1417_v30  ;;  %v1711_v30 = vld [vmem:[#allocation8 + $0x68] sm:$0xff] }
  0x69   :  { %847 = vmatpush.bf16.msra.mxu3 %v1481_v6 }
  0x6a   :  { %809 = vmatpush.bf16.msra.mxu0 %v1281_v12 }
  0x6b   :  { %822 = vmatpush.bf16.msra.mxu1 %v1345_v13 }
  0x6c   :  { %835 = vmatpush.bf16.msra.mxu2 %v1409_v14  ;;  %v1709_v14 = vld [vmem:[#allocation8 + $0x58] sm:$0xff] }
  0x6d   :  { %848 = vmatpush.bf16.msra.mxu3 %v1473_v19 }
  0x6e   :  { %810 = vmatpush.bf16.msra.mxu0 %v1273_v25 }
  0x6f   :  { %823 = vmatpush.bf16.msra.mxu1 %v1337_v26 }
  0x70   :  { %836 = vmatpush.bf16.msra.mxu2 %v1401_v27 }
  0x71   :  { %849 = vmatpush.bf16.msra.mxu3 %v1465_v32 }
  0x72   :  { %811 = vmatpush.bf16.msra.mxu0 %v1265_v42 }
  0x73   :  { %824 = vmatpush.bf16.msra.mxu1 %v1329_v43 }
  0x74   :  { %837 = vmatpush.bf16.msra.mxu2 %v1393_v44 }
  0x75   :  { %850 = vmatpush.bf16.msra.mxu3 %v1457_v48 }
  0x76   :  { %812 = vmatpush.bf16.msra.mxu0 %v1257_v54  ;;  %v1720_v54 = vld [vmem:[#allocation10 + $0x30] sm:$0xff] }
  0x77   :  { %825 = vmatpush.bf16.msra.mxu1 %v1321_v55  ;;  %v1719_v55 = vld [vmem:[#allocation10 + $0x28] sm:$0xff] }
  0x78   :  { %838 = vmatpush.bf16.msra.mxu2 %v1385_v56  ;;  %v1718_v56 = vld [vmem:[#allocation10 + $0x20] sm:$0xff] }
  0x79   :  { %851 = vmatpush.bf16.msra.mxu3 %v1449_v57  ;;  %813 = vmatmul.bf16.vlgmr.msra.gmra.mxu0 %v1968_v33  ;;  %v215_v33 = vld [vmem:[#allocation7] sm:$0x3] }
  0x7a   :  { %993 = vmatpush.bf16.msrb.mxu0 %v1705_v58  ;;  %826 = vmatmul.bf16.vlgmr.msra.gmra.mxu1 %v1971_v41  ;;  %v1713_v41 = vld [vmem:[#allocation8 + $0x78] sm:$0xff]  ;;  %v218_v32 = vperm.slane %v215_v33, 1  ;;  %v1716_v58 = vld [vmem:[#allocation10 + $0x10] sm:$0xff] }
  0x7b   :  { %839 = vmatmul.bf16.vlgmr.msra.gmra.mxu2 %v1975_v34  ;;  %1006 = vmatpush.bf16.msrb.mxu1 %v1713_v41  ;;  %v1712_v34 = vld [vmem:[#allocation8 + $0x70] sm:$0xff]  ;;  %v1717_v57 = vld [vmem:[#allocation10 + $0x18] sm:$0xff] }
  0x7c   :  { %852 = vmatmul.bf16.vlgmr.msra.gmra.mxu3 %v1977_v38  ;;  %v217_v38 = vperm.slane %v215_v33, 0  ;;  %1089 = vmatpush.bf16.msrb.mxu2 %v1721_v53 }
  0x7e   :  { %994 = vmatpush.bf16.msrb.mxu0 %v1704_v59 }
  0x7f   :  { %1007 = vmatpush.bf16.msrb.mxu1 %v1712_v34  ;;  %v1733_v34 = vld [vmem:[%s2002_s6] ss:$0 sm:$0xff] }
  0x80   :  { %1090 = vmatpush.bf16.msrb.mxu2 %v1720_v54 }
  0x82   :  { %995 = vmatpush.bf16.msrb.mxu0 %v1703_v60  ;;  %v1715_v60 = vld [vmem:[#allocation10 + $0x8] sm:$0xff] }
  0x83   :  { %1008 = vmatpush.bf16.msrb.mxu1 %v1711_v30 }
  0x84   :  { %1091 = vmatpush.bf16.msrb.mxu2 %v1719_v55 }
  0x86   :  { %996 = vmatpush.bf16.msrb.mxu0 %v1702_v61  ;;  %v1714_v61 = vld [vmem:[#allocation10] sm:$0xff] }
  0x87   :  { %1009 = vmatpush.bf16.msrb.mxu1 %v1710_v7 }
  0x88   :  { %1092 = vmatpush.bf16.msrb.mxu2 %v1718_v56 }
  0x8a   :  { %997 = vmatpush.bf16.msrb.mxu0 %v1701_v62 }
  0x8b   :  { %1010 = vmatpush.bf16.msrb.mxu1 %v1709_v14 }
  0x8c   :  { %1093 = vmatpush.bf16.msrb.mxu2 %v1717_v57 }
  0x8e   :  { %998 = vmatpush.bf16.msrb.mxu0 %v1700_v63  ;;  %v1732_v63 = vld [vmem:[%s2000_s4] ss:$0 sm:$0xff] }
  0x8f   :  { %1011 = vmatpush.bf16.msrb.mxu1 %v1708_v16 }
  0x90   :  { %1094 = vmatpush.bf16.msrb.mxu2 %v1716_v58 }
  0x92   :  { %999 = vmatpush.bf16.msrb.mxu0 %v1699_v0 }
  0x93   :  { %1012 = vmatpush.bf16.msrb.mxu1 %v1707_v22 }
  0x94   :  { %1095 = vmatpush.bf16.msrb.mxu2 %v1715_v60 }
  0x96   :  { %1000 = vmatpush.bf16.msrb.mxu0 %v1698_v17 }
  0x97   :  { %1013 = vmatpush.bf16.msrb.mxu1 %v1706_v28 }
  0x98   :  { %1096 = vmatpush.bf16.msrb.mxu2 %v1714_v61 }
  0xb8   :  { %v710_v1 = vpop.f32.mrf.mxu0 }
  0xb9   :  { %v711_v3 = vadd.f32 %v710_v1, %v217_v38 }
  0xbd   :  { %v723_v2 = vpop.f32.mrf.mxu1 }
  0xbe   :  { %v724_v8 = vadd.f32 %v723_v2, %v711_v3 }
  0xc0   :  { %v712_v4 = vpop.f32.mrf.mxu0 }
  0xc4   :  { %v736_v6 = vpop.f32.mrf.mxu2 }
  0xc5   :  { %v725_v5 = vpop.f32.mrf.mxu1  ;;  %v749_v9 = vpop.f32.mrf.mxu3  ;;  %v737_v10 = vadd.f32 %v736_v6, %v724_v8 }
  0xc7   :  { %v750_v12 = vadd.f32 %v749_v9, %v737_v10 }
  0xcc   :  { %v738_v11 = vpop.f32.mrf.mxu2 }
  0xcd   :  { %v751_v13 = vpop.f32.mrf.mxu3 }
  0xd6   :  { %v762_v15 = vpop.f32.mrf.mxu0 }
  0xd7   :  { %v763_v18 = vadd.f32 %v762_v15, %v750_v12  ;;  %v775_v19 = vpop.f32.mrf.mxu1 }
  0xd9   :  { %v776_v20 = vadd.f32 %v775_v19, %v763_v18 }
  0xdb   :  { %v857_v21 = vmax.f32 %v776_v20, 0.0 }
  0xdd   :  { %v859_v23 = vpack.c.bf16 %v857_v21, %v857_v21 }
  0xde   :  { %v788_v24 = vpop.f32.mrf.mxu2  ;;  %v764_v26 = vpop.f32.mrf.mxu0 }
  0xdf   :  { %v801_v25 = vpop.f32.mrf.mxu3  ;;  %1001 = vmatmul.bf16.vlgmr.msrb.gmra.mxu0 %v859_v23  ;;  %v777_v27 = vpop.f32.mrf.mxu1  ;;  %v789_v35 = vadd.f32 %v788_v24, %v218_v32 }
  0xe1   :  { %v802_v36 = vadd.f32 %v801_v25, %v789_v35 }
  0xe6   :  { %v790_v29 = vpop.f32.mrf.mxu2 }
  0xe7   :  { %v803_v31 = vpop.f32.mrf.mxu3 }
  0xf6   :  { %v814_v37 = vpop.f32.mrf.mxu0 }
  0xf7   :  { %v827_v39 = vpop.f32.mrf.mxu1  ;;  %v815_v40 = vadd.f32 %v814_v37, %v802_v36 }
  0xf9   :  { %v828_v42 = vadd.f32 %v827_v39, %v815_v40 }
  0xfe   :  { %v840_v43 = vpop.f32.mrf.mxu2  ;;  %v816_v46 = vpop.f32.mrf.mxu0 }
  0xff   :  { %v841_v44 = vadd.f32 %v840_v43, %v828_v42  ;;  %v853_v45 = vpop.f32.mrf.mxu3  ;;  %v829_v47 = vpop.f32.mrf.mxu1 }
 0x101   :  { %v854_v48 = vadd.f32 %v853_v45, %v841_v44 }
 0x103   :  { %v858_v49 = vmax.f32 %v854_v48, 0.0 }
 0x105   :  { %v860_v50 = vpack.c.bf16 %v858_v49, %v858_v49 }
 0x106   :  { %v842_v51 = vpop.f32.mrf.mxu2 }
 0x107   :  { %v855_v52 = vpop.f32.mrf.mxu3  ;;  %1014 = vmatmul.bf16.vlgmr.msrb.gmra.mxu1 %v860_v50 }
 0x15c   :  { %v1002_v59 = vpop.f32.mrf.mxu0 }
 0x15d   :  { %v1003_v0 = vadd.f32 %v1732_v63, %v1002_v59 }
 0x164   :  { %v1004_v62 = vpop.f32.mrf.mxu0 }
 0x184   :  { %v1015_v17 = vpop.f32.mrf.mxu1 }
 0x185   :  { %v1016_v33 = vadd.f32 %v1015_v17, %v1003_v0 }
 0x187   :  { %v1019_v1 = vmax.f32 %v1016_v33, 0.0 }
 0x189   :  { %v1020_v41 = vpack.c.bf16 %v1019_v1, %v1019_v1 }
 0x18b   :  { %1097 = vmatmul.bf16.vlgmr.msrb.gmra.mxu2 %v1020_v41 }
 0x18c   :  { %v1017_v2 = vpop.f32.mrf.mxu1 }
 0x20e   :  { %v1098_v38 = vpop.f32.mrf.mxu2 }
 0x20f   :  { %v1099_v30 = vadd.f32 %v1733_v34, %v1098_v38 }
 0x211   :  { %1102 = vst [vmem:[#allocation11] sm:$0xff] %v1099_v30 }
 0x212   :  { %1113 = dma.vmem_to_hbm [thread:$0]  %s1109_s30, 128, %s1111_s10, [#allocation4]  }
 0x216   :  { %v1100_v3 = vpop.f32.mrf.mxu2 }
 0x217   :  { %1896 = dma.done.wait [#allocation4], 128  }
 0x218   :  { %1897 = vsyncadd [#allocation4], 4294967168 }
 0x219   :  { %1118 = vsyncpa [#allocation3], 1 }
 0x21a   :  { %1119 = vsyncpa [#allocation6], 1 }
 0x21b   :  { %1120 = vsyncpa [#allocation9], 1 }
 0x21c   :  { %1121 = vsyncpa [#allocation4], 1 }

</bundles_post_ra>
